<compile_context>
chip_gen: v6e
topology: v6e:2x2x1
jax: 0.10.0
libtpu: 0.0.40
codegen_flags: <defaults>
</compile_context>

<pallas_src>
import numpy as np
import jax
import jax.numpy as jnp
from jax import lax
from jax.experimental import pallas as pl
from jax.experimental.pallas import tpu as pltpu

_ID_PAD = np.int32(np.iinfo(np.int32).min + 1)   # padded id slot, never a valid id
_PIX_PAD = np.int32(np.iinfo(np.int32).min)      # padded pixel, never equals any id
_ROWS = 8                     # sublane rows per grid block -> (8,128)-aligned blocks
_MAX_LANE_CHUNK = 16384       # lanes per row -> up to 8*16384 = 128K pixels / step
_MASK_BYTES_BUDGET = 2 << 20  # cap on per-row (Pp+Tp, L) bf16 mask temporaries
_N_SPLIT = 2                  # leading "parallel" grid axis (one per TC on v7x)


def _round_up(x, m):
    return ((x + m - 1) // m) * m


def _intersect_kernel(pm_ref, tm_ref, pids_ref, tids_ref, inter_ref):
    """Accumulates pairwise intersection counts for this core's pixel range."""
    k = pl.program_id(1)

    @pl.when(k == 0)
    def _init():
        inter_ref[...] = jnp.zeros_like(inter_ref)

    pids = pids_ref[...]                       # (Pp, 1) int32
    tids = tids_ref[...]                       # (Tp, 1) int32

    def row_body(r, acc):
        # (1, L) pixel rows; implicit sublane broadcast against the id columns.
        pm_r = pm_ref[pl.ds(r, 1), :]
        tm_r = tm_ref[pl.ds(r, 1), :]
        # Binary masks built directly in bf16 (exact 0/1 values).
        p_bin = (pm_r == pids).astype(jnp.bfloat16)   # (Pp, L)
        t_bin = (tm_r == tids).astype(jnp.bfloat16)   # (Tp, L)
        # Pairwise intersection counts on the MXU, f32 accumulation.
        return acc + lax.dot_general(
            p_bin, t_bin,
            dimension_numbers=(((1,), (1,)), ((), ())),
            preferred_element_type=jnp.float32)       # (Pp, Tp)

    part = lax.fori_loop(0, _ROWS, row_body,
                         jnp.zeros(inter_ref.shape, jnp.float32),
                         unroll=True)
    inter_ref[...] += part


def instance_segmentation_loss(pred_mask, true_mask):
    """pred_mask, true_mask: integer (H, W) instance maps (host / concrete)."""
    pm = np.asarray(pred_mask).astype(np.int32)
    tm = np.asarray(true_mask).astype(np.int32)

    # TODO(synk): torch.unique is data-dependent, so instance extraction and
    # per-instance areas stay on the host; instance counts are baked in at
    # trace time (no jit/vmap over the raw masks).
    p_uniq, p_cnt = np.unique(pm, return_counts=True)
    t_uniq, t_cnt = np.unique(tm, return_counts=True)
    p_keep = p_uniq != 0
    t_keep = t_uniq != 0
    pred_ids, pred_area = p_uniq[p_keep], p_cnt[p_keep]
    true_ids, true_area = t_uniq[t_keep], t_cnt[t_keep]
    P, T = int(pred_ids.size), int(true_ids.size)

    if P == 0 and T == 0:
        return jnp.float32(0.0)
    # torch.stack([]) would raise in the reference if only one side is empty.
    assert P > 0 and T > 0, \
        "reference implementation requires at least one instance on each side"

    p_pad = max(8, _round_up(P, 8))
    t_pad = max(8, _round_up(T, 8))
    # NOTE: (p_pad, t_pad) lives untiled in VMEM; fine for up to a few thousand
    # instances per side, would need an instance-axis grid beyond that.

    hw = pm.size
    # Lanes per sublane row: adaptive, multiple of 128, bounded so the per-row
    # bf16 mask temporaries stay within budget on every TPU generation.
    half_hw = -(-hw // _N_SPLIT)
    lane_needed = _round_up(max(1, -(-half_hw // _ROWS)), 128)
    budget_lanes = (_MASK_BYTES_BUDGET // (2 * (p_pad + t_pad))) // 128 * 128
    lane_cap = max(128, min(_MAX_LANE_CHUNK, budget_lanes))
    lane_chunk = min(lane_cap, lane_needed)
    pix_per_step = _ROWS * lane_chunk
    nsteps = -(-half_hw // pix_per_step)          # steps per core-split
    hw_pad = _N_SPLIT * nsteps * pix_per_step

    pm_flat = np.full((hw_pad,), _PIX_PAD, np.int32)
    pm_flat[:hw] = pm.reshape(-1)
    tm_flat = np.full((hw_pad,), _PIX_PAD, np.int32)
    tm_flat[:hw] = tm.reshape(-1)
    pm_blk = pm_flat.reshape(_N_SPLIT * nsteps * _ROWS, lane_chunk)
    tm_blk = tm_flat.reshape(_N_SPLIT * nsteps * _ROWS, lane_chunk)

    pids = np.full((p_pad, 1), _ID_PAD, np.int32)
    pids[:P, 0] = pred_ids
    tids = np.full((t_pad, 1), _ID_PAD, np.int32)
    tids[:T, 0] = true_ids

    flops = 2 * p_pad * t_pad * hw_pad + 2 * (p_pad + t_pad) * hw_pad
    bytes_accessed = (2 * hw_pad * 4 + (p_pad + t_pad) * 4
                      + _N_SPLIT * p_pad * t_pad * 4)

    inter_parts = pl.pallas_call(
        _intersect_kernel,
        out_shape=jax.ShapeDtypeStruct((_N_SPLIT, p_pad, t_pad), jnp.float32),
        grid=(_N_SPLIT, nsteps),
        in_specs=[
            pl.BlockSpec((_ROWS, lane_chunk), lambda c, k: (c * nsteps + k, 0)),
            pl.BlockSpec((_ROWS, lane_chunk), lambda c, k: (c * nsteps + k, 0)),
            pl.BlockSpec((p_pad, 1), lambda c, k: (0, 0)),
            pl.BlockSpec((t_pad, 1), lambda c, k: (0, 0)),
        ],
        out_specs=pl.BlockSpec((None, p_pad, t_pad), lambda c, k: (c, 0, 0)),
        compiler_params=pltpu.CompilerParams(
            dimension_semantics=("parallel", "arbitrary"),
            vmem_limit_bytes=32 * 1024 * 1024),
        cost_estimate=pl.CostEstimate(
            flops=int(flops), transcendentals=0,
            bytes_accessed=int(bytes_accessed)),
    )(jnp.asarray(pm_blk), jnp.asarray(tm_blk),
      jnp.asarray(pids), jnp.asarray(tids))

    # Tiny (P, T) IoU / max / normalize epilogue in plain JAX.
    inter = inter_parts.sum(axis=0)[:P, :T]                     # (P, T)
    parea = jnp.asarray(pred_area.astype(np.float32)).reshape(P, 1)
    tarea = jnp.asarray(true_area.astype(np.float32)).reshape(1, T)
    union = parea + tarea - inter
    iou = jnp.where(union == 0.0, 0.0, inter / union)
    pred_losses = 1.0 - jnp.max(iou, axis=1)                    # (P,)
    true_losses = 1.0 - jnp.max(iou, axis=0)                    # (T,)
    return (pred_losses.sum() + true_losses.sum()) / jnp.float32(P + T)


def _reference_loss(pm, tm):
    """Pure-numpy reference mirroring the PyTorch module."""
    pm = np.asarray(pm)
    tm = np.asarray(tm)
    pids = [i for i in np.unique(pm) if i != 0]
    tids = [i for i in np.unique(tm) if i != 0]
    if len(pids) + len(tids) == 0:
        return 0.0
    pbin = [pm == i for i in pids]
    tbin = [tm == i for i in tids]

    def iou(a, b):
        inter = np.logical_and(a, b).sum()
        union = np.logical_or(a, b).sum()
        return 0.0 if union == 0 else inter / union

    pred_losses = [1.0 - max(iou(p, t) for t in tbin) for p in pbin]
    true_losses = [1.0 - max(iou(p, t) for p in pbin) for t in tbin]
    return (sum(pred_losses) + sum(true_losses)) / (len(pids) + len(tids))


if __name__ == "__main__":
    key = jax.random.PRNGKey(0)
    k1, k2 = jax.random.split(key)
    H, W = 16, 16
    pred_mask = jax.random.randint(k1, (H, W), 0, 4, dtype=jnp.int32)   # ids 0..3
    true_mask = jax.random.randint(k2, (H, W), 0, 5, dtype=jnp.int32)   # ids 0..4

    loss = instance_segmentation_loss(pred_mask, true_mask)
    loss = jax.block_until_ready(loss)

    ref = _reference_loss(np.asarray(pred_mask), np.asarray(true_mask))
    assert np.allclose(float(loss), ref, rtol=1e-5, atol=1e-5), (float(loss), ref)
    print("KERNEL_OK")
</pallas_src>

<mosaic_0001>
module attributes {stable_mosaic.version = 11 : i64} {
  func.func @_intersect_kernel(%arg0: i32, %arg1: i32, %arg2: memref<8x128xi32, #tpu.memory_space<vmem>>, %arg3: memref<8x128xi32, #tpu.memory_space<vmem>>, %arg4: memref<8x1xi32, #tpu.memory_space<vmem>>, %arg5: memref<8x1xi32, #tpu.memory_space<vmem>>, %arg6: memref<1x8x8xf32, #tpu.memory_space<vmem>>) attributes {dimension_semantics = [#tpu.dimension_semantics<parallel>, #tpu.dimension_semantics<arbitrary>], iteration_bounds = array<i64: 2, 1>, scalar_prefetch = 0 : i64, scratch_operands = 0 : i64, tpu.core_type = #tpu.core_type<tc>, window_params = [{transform_indices = @transform_0, window_bounds = array<i64: 8, 128>}, {transform_indices = @transform_1, window_bounds = array<i64: 8, 128>}, {pipeline_mode = #tpu.pipeline_mode<synchronous>, transform_indices = @transform_2, window_bounds = array<i64: 8, 1>}, {pipeline_mode = #tpu.pipeline_mode<synchronous>, transform_indices = @transform_3, window_bounds = array<i64: 8, 1>}, {transform_indices = @transform_4, window_bounds = array<i64: 1, 8, 8>}]} {
    %c0_i32 = arith.constant 0 : i32
    %0 = arith.cmpi eq, %arg1, %c0_i32 : i32
    %1 = arith.extui %0 : i1 to i32
    %c0_i32_0 = arith.constant 0 : i32
    %2 = arith.cmpi ne, %1, %c0_i32_0 : i32
    scf.if %2 {
      %cst_35 = arith.constant 0.000000e+00 : f32
      %156 = vector.broadcast %cst_35 : f32 to vector<8x8xf32>
      %c0_36 = arith.constant 0 : index
      %c0_37 = arith.constant 0 : index
      %c0_38 = arith.constant 0 : index
      %157 = vector.load %arg6[%c0_36, %c0_37, %c0_38] : memref<1x8x8xf32, #tpu.memory_space<vmem>>, vector<1x8x8xf32>
      %158 = vector.shape_cast %157 : vector<1x8x8xf32> to vector<8x8xf32>
      %159 = vector.shape_cast %156 : vector<8x8xf32> to vector<1x8x8xf32>
      tpu.vector_store %arg6[%c0_36, %c0_37, %c0_38], %159 {strides = array<i32>} : memref<1x8x8xf32, #tpu.memory_space<vmem>>, vector<1x8x8xf32>,
    } else {
    }
    %c0 = arith.constant 0 : index
    %c0_1 = arith.constant 0 : index
    %3 = vector.load %arg4[%c0, %c0_1] : memref<8x1xi32, #tpu.memory_space<vmem>>, vector<8x1xi32>
    %c0_2 = arith.constant 0 : index
    %c0_3 = arith.constant 0 : index
    %4 = vector.load %arg5[%c0_2, %c0_3] : memref<8x1xi32, #tpu.memory_space<vmem>>, vector<8x1xi32>
    %cst = arith.constant 0.000000e+00 : f32
    %5 = vector.broadcast %cst : f32 to vector<8x8xf32>
    %c0_i32_4 = arith.constant 0 : i32
    %6 = arith.index_cast %c0_i32_4 : i32 to index
    %c0_5 = arith.constant 0 : index
    %7 = vector.load %arg2[%6, %c0_5] : memref<8x128xi32, #tpu.memory_space<vmem>>, vector<1x128xi32>
    %8 = arith.index_cast %c0_i32_4 : i32 to index
    %c0_6 = arith.constant 0 : index
    %9 = vector.load %arg3[%8, %c0_6] : memref<8x128xi32, #tpu.memory_space<vmem>>, vector<1x128xi32>
    %10 = vector.broadcast %7 : vector<1x128xi32> to vector<8x128xi32>
    %11 = vector.broadcast %3 : vector<8x1xi32> to vector<8x128xi32>
    %12 = arith.cmpi eq, %10, %11 : vector<8x128xi32>
    %13 = arith.extui %12 : vector<8x128xi1> to vector<8x128xi32>
    %14 = arith.sitofp %13 : vector<8x128xi32> to vector<8x128xf32>
    %15 = arith.truncf %14 : vector<8x128xf32> to vector<8x128xbf16>
    %16 = vector.broadcast %9 : vector<1x128xi32> to vector<8x128xi32>
    %17 = vector.broadcast %4 : vector<8x1xi32> to vector<8x128xi32>
    %18 = arith.cmpi eq, %16, %17 : vector<8x128xi32>
    %19 = arith.extui %18 : vector<8x128xi1> to vector<8x128xi32>
    %20 = arith.sitofp %19 : vector<8x128xi32> to vector<8x128xf32>
    %21 = arith.truncf %20 : vector<8x128xf32> to vector<8x128xbf16>
    %cst_7 = arith.constant dense<0.000000e+00> : vector<8x8xf32>
    %22 = tpu.matmul %15, %21, %cst_7 {dimension_numbers = #tpu.dot_dimension_numbers<[1], [1], [0], [0], [0, 0, 1, 0], [], []>} : vector<8x128xbf16>, vector<8x128xbf16>, vector<8x8xf32> -> vector<8x8xf32>
    %23 = arith.addf %5, %22 : vector<8x8xf32>
    %c1_i32 = arith.constant 1 : i32
    %24 = arith.index_cast %c1_i32 : i32 to index
    %c0_8 = arith.constant 0 : index
    %25 = vector.load %arg2[%24, %c0_8] : memref<8x128xi32, #tpu.memory_space<vmem>>, vector<1x128xi32>
    %26 = arith.index_cast %c1_i32 : i32 to index
    %c0_9 = arith.constant 0 : index
    %27 = vector.load %arg3[%26, %c0_9] : memref<8x128xi32, #tpu.memory_space<vmem>>, vector<1x128xi32>
    %28 = vector.broadcast %25 : vector<1x128xi32> to vector<8x128xi32>
    %29 = vector.broadcast %3 : vector<8x1xi32> to vector<8x128xi32>
    %30 = arith.cmpi eq, %28, %29 : vector<8x128xi32>
    %31 = arith.extui %30 : vector<8x128xi1> to vector<8x128xi32>
    %32 = arith.sitofp %31 : vector<8x128xi32> to vector<8x128xf32>
    %33 = arith.truncf %32 : vector<8x128xf32> to vector<8x128xbf16>
    %34 = vector.broadcast %27 : vector<1x128xi32> to vector<8x128xi32>
    %35 = vector.broadcast %4 : vector<8x1xi32> to vector<8x128xi32>
    %36 = arith.cmpi eq, %34, %35 : vector<8x128xi32>
    %37 = arith.extui %36 : vector<8x128xi1> to vector<8x128xi32>
    %38 = arith.sitofp %37 : vector<8x128xi32> to vector<8x128xf32>
    %39 = arith.truncf %38 : vector<8x128xf32> to vector<8x128xbf16>
    %cst_10 = arith.constant dense<0.000000e+00> : vector<8x8xf32>
    %40 = tpu.matmul %33, %39, %cst_10 {dimension_numbers = #tpu.dot_dimension_numbers<[1], [1], [0], [0], [0, 0, 1, 0], [], []>} : vector<8x128xbf16>, vector<8x128xbf16>, vector<8x8xf32> -> vector<8x8xf32>
    %41 = arith.addf %23, %40 : vector<8x8xf32>
    %c2_i32 = arith.constant 2 : i32
    %42 = arith.index_cast %c2_i32 : i32 to index
    %c0_11 = arith.constant 0 : index
    %43 = vector.load %arg2[%42, %c0_11] : memref<8x128xi32, #tpu.memory_space<vmem>>, vector<1x128xi32>
    %44 = arith.index_cast %c2_i32 : i32 to index
    %c0_12 = arith.constant 0 : index
    %45 = vector.load %arg3[%44, %c0_12] : memref<8x128xi32, #tpu.memory_space<vmem>>, vector<1x128xi32>
    %46 = vector.broadcast %43 : vector<1x128xi32> to vector<8x128xi32>
    %47 = vector.broadcast %3 : vector<8x1xi32> to vector<8x128xi32>
    %48 = arith.cmpi eq, %46, %47 : vector<8x128xi32>
    %49 = arith.extui %48 : vector<8x128xi1> to vector<8x128xi32>
    %50 = arith.sitofp %49 : vector<8x128xi32> to vector<8x128xf32>
    %51 = arith.truncf %50 : vector<8x128xf32> to vector<8x128xbf16>
    %52 = vector.broadcast %45 : vector<1x128xi32> to vector<8x128xi32>
    %53 = vector.broadcast %4 : vector<8x1xi32> to vector<8x128xi32>
    %54 = arith.cmpi eq, %52, %53 : vector<8x128xi32>
    %55 = arith.extui %54 : vector<8x128xi1> to vector<8x128xi32>
    %56 = arith.sitofp %55 : vector<8x128xi32> to vector<8x128xf32>
    %57 = arith.truncf %56 : vector<8x128xf32> to vector<8x128xbf16>
    %cst_13 = arith.constant dense<0.000000e+00> : vector<8x8xf32>
    %58 = tpu.matmul %51, %57, %cst_13 {dimension_numbers = #tpu.dot_dimension_numbers<[1], [1], [0], [0], [0, 0, 1, 0], [], []>} : vector<8x128xbf16>, vector<8x128xbf16>, vector<8x8xf32> -> vector<8x8xf32>
    %59 = arith.addf %41, %58 : vector<8x8xf32>
    %c3_i32 = arith.constant 3 : i32
    %60 = arith.index_cast %c3_i32 : i32 to index
    %c0_14 = arith.constant 0 : index
    %61 = vector.load %arg2[%60, %c0_14] : memref<8x128xi32, #tpu.memory_space<vmem>>, vector<1x128xi32>
    %62 = arith.index_cast %c3_i32 : i32 to index
    %c0_15 = arith.constant 0 : index
    %63 = vector.load %arg3[%62, %c0_15] : memref<8x128xi32, #tpu.memory_space<vmem>>, vector<1x128xi32>
    %64 = vector.broadcast %61 : vector<1x128xi32> to vector<8x128xi32>
    %65 = vector.broadcast %3 : vector<8x1xi32> to vector<8x128xi32>
    %66 = arith.cmpi eq, %64, %65 : vector<8x128xi32>
    %67 = arith.extui %66 : vector<8x128xi1> to vector<8x128xi32>
    %68 = arith.sitofp %67 : vector<8x128xi32> to vector<8x128xf32>
    %69 = arith.truncf %68 : vector<8x128xf32> to vector<8x128xbf16>
    %70 = vector.broadcast %63 : vector<1x128xi32> to vector<8x128xi32>
    %71 = vector.broadcast %4 : vector<8x1xi32> to vector<8x128xi32>
    %72 = arith.cmpi eq, %70, %71 : vector<8x128xi32>
    %73 = arith.extui %72 : vector<8x128xi1> to vector<8x128xi32>
    %74 = arith.sitofp %73 : vector<8x128xi32> to vector<8x128xf32>
    %75 = arith.truncf %74 : vector<8x128xf32> to vector<8x128xbf16>
    %cst_16 = arith.constant dense<0.000000e+00> : vector<8x8xf32>
    %76 = tpu.matmul %69, %75, %cst_16 {dimension_numbers = #tpu.dot_dimension_numbers<[1], [1], [0], [0], [0, 0, 1, 0], [], []>} : vector<8x128xbf16>, vector<8x128xbf16>, vector<8x8xf32> -> vector<8x8xf32>
    %77 = arith.addf %59, %76 : vector<8x8xf32>
    %c4_i32 = arith.constant 4 : i32
    %78 = arith.index_cast %c4_i32 : i32 to index
    %c0_17 = arith.constant 0 : index
    %79 = vector.load %arg2[%78, %c0_17] : memref<8x128xi32, #tpu.memory_space<vmem>>, vector<1x128xi32>
    %80 = arith.index_cast %c4_i32 : i32 to index
    %c0_18 = arith.constant 0 : index
    %81 = vector.load %arg3[%80, %c0_18] : memref<8x128xi32, #tpu.memory_space<vmem>>, vector<1x128xi32>
    %82 = vector.broadcast %79 : vector<1x128xi32> to vector<8x128xi32>
    %83 = vector.broadcast %3 : vector<8x1xi32> to vector<8x128xi32>
    %84 = arith.cmpi eq, %82, %83 : vector<8x128xi32>
    %85 = arith.extui %84 : vector<8x128xi1> to vector<8x128xi32>
    %86 = arith.sitofp %85 : vector<8x128xi32> to vector<8x128xf32>
    %87 = arith.truncf %86 : vector<8x128xf32> to vector<8x128xbf16>
    %88 = vector.broadcast %81 : vector<1x128xi32> to vector<8x128xi32>
    %89 = vector.broadcast %4 : vector<8x1xi32> to vector<8x128xi32>
    %90 = arith.cmpi eq, %88, %89 : vector<8x128xi32>
    %91 = arith.extui %90 : vector<8x128xi1> to vector<8x128xi32>
    %92 = arith.sitofp %91 : vector<8x128xi32> to vector<8x128xf32>
    %93 = arith.truncf %92 : vector<8x128xf32> to vector<8x128xbf16>
    %cst_19 = arith.constant dense<0.000000e+00> : vector<8x8xf32>
    %94 = tpu.matmul %87, %93, %cst_19 {dimension_numbers = #tpu.dot_dimension_numbers<[1], [1], [0], [0], [0, 0, 1, 0], [], []>} : vector<8x128xbf16>, vector<8x128xbf16>, vector<8x8xf32> -> vector<8x8xf32>
    %95 = arith.addf %77, %94 : vector<8x8xf32>
    %c5_i32 = arith.constant 5 : i32
    %96 = arith.index_cast %c5_i32 : i32 to index
    %c0_20 = arith.constant 0 : index
    %97 = vector.load %arg2[%96, %c0_20] : memref<8x128xi32, #tpu.memory_space<vmem>>, vector<1x128xi32>
    %98 = arith.index_cast %c5_i32 : i32 to index
    %c0_21 = arith.constant 0 : index
    %99 = vector.load %arg3[%98, %c0_21] : memref<8x128xi32, #tpu.memory_space<vmem>>, vector<1x128xi32>
    %100 = vector.broadcast %97 : vector<1x128xi32> to vector<8x128xi32>
    %101 = vector.broadcast %3 : vector<8x1xi32> to vector<8x128xi32>
    %102 = arith.cmpi eq, %100, %101 : vector<8x128xi32>
    %103 = arith.extui %102 : vector<8x128xi1> to vector<8x128xi32>
    %104 = arith.sitofp %103 : vector<8x128xi32> to vector<8x128xf32>
    %105 = arith.truncf %104 : vector<8x128xf32> to vector<8x128xbf16>
    %106 = vector.broadcast %99 : vector<1x128xi32> to vector<8x128xi32>
    %107 = vector.broadcast %4 : vector<8x1xi32> to vector<8x128xi32>
    %108 = arith.cmpi eq, %106, %107 : vector<8x128xi32>
    %109 = arith.extui %108 : vector<8x128xi1> to vector<8x128xi32>
    %110 = arith.sitofp %109 : vector<8x128xi32> to vector<8x128xf32>
    %111 = arith.truncf %110 : vector<8x128xf32> to vector<8x128xbf16>
    %cst_22 = arith.constant dense<0.000000e+00> : vector<8x8xf32>
    %112 = tpu.matmul %105, %111, %cst_22 {dimension_numbers = #tpu.dot_dimension_numbers<[1], [1], [0], [0], [0, 0, 1, 0], [], []>} : vector<8x128xbf16>, vector<8x128xbf16>, vector<8x8xf32> -> vector<8x8xf32>
    %113 = arith.addf %95, %112 : vector<8x8xf32>
    %c6_i32 = arith.constant 6 : i32
    %114 = arith.index_cast %c6_i32 : i32 to index
    %c0_23 = arith.constant 0 : index
    %115 = vector.load %arg2[%114, %c0_23] : memref<8x128xi32, #tpu.memory_space<vmem>>, vector<1x128xi32>
    %116 = arith.index_cast %c6_i32 : i32 to index
    %c0_24 = arith.constant 0 : index
    %117 = vector.load %arg3[%116, %c0_24] : memref<8x128xi32, #tpu.memory_space<vmem>>, vector<1x128xi32>
    %118 = vector.broadcast %115 : vector<1x128xi32> to vector<8x128xi32>
    %119 = vector.broadcast %3 : vector<8x1xi32> to vector<8x128xi32>
    %120 = arith.cmpi eq, %118, %119 : vector<8x128xi32>
    %121 = arith.extui %120 : vector<8x128xi1> to vector<8x128xi32>
    %122 = arith.sitofp %121 : vector<8x128xi32> to vector<8x128xf32>
    %123 = arith.truncf %122 : vector<8x128xf32> to vector<8x128xbf16>
    %124 = vector.broadcast %117 : vector<1x128xi32> to vector<8x128xi32>
    %125 = vector.broadcast %4 : vector<8x1xi32> to vector<8x128xi32>
    %126 = arith.cmpi eq, %124, %125 : vector<8x128xi32>
    %127 = arith.extui %126 : vector<8x128xi1> to vector<8x128xi32>
    %128 = arith.sitofp %127 : vector<8x128xi32> to vector<8x128xf32>
    %129 = arith.truncf %128 : vector<8x128xf32> to vector<8x128xbf16>
    %cst_25 = arith.constant dense<0.000000e+00> : vector<8x8xf32>
    %130 = tpu.matmul %123, %129, %cst_25 {dimension_numbers = #tpu.dot_dimension_numbers<[1], [1], [0], [0], [0, 0, 1, 0], [], []>} : vector<8x128xbf16>, vector<8x128xbf16>, vector<8x8xf32> -> vector<8x8xf32>
    %131 = arith.addf %113, %130 : vector<8x8xf32>
    %c7_i32 = arith.constant 7 : i32
    %132 = arith.index_cast %c7_i32 : i32 to index
    %c0_26 = arith.constant 0 : index
    %133 = vector.load %arg2[%132, %c0_26] : memref<8x128xi32, #tpu.memory_space<vmem>>, vector<1x128xi32>
    %134 = arith.index_cast %c7_i32 : i32 to index
    %c0_27 = arith.constant 0 : index
    %135 = vector.load %arg3[%134, %c0_27] : memref<8x128xi32, #tpu.memory_space<vmem>>, vector<1x128xi32>
    %136 = vector.broadcast %133 : vector<1x128xi32> to vector<8x128xi32>
    %137 = vector.broadcast %3 : vector<8x1xi32> to vector<8x128xi32>
    %138 = arith.cmpi eq, %136, %137 : vector<8x128xi32>
    %139 = arith.extui %138 : vector<8x128xi1> to vector<8x128xi32>
    %140 = arith.sitofp %139 : vector<8x128xi32> to vector<8x128xf32>
    %141 = arith.truncf %140 : vector<8x128xf32> to vector<8x128xbf16>
    %142 = vector.broadcast %135 : vector<1x128xi32> to vector<8x128xi32>
    %143 = vector.broadcast %4 : vector<8x1xi32> to vector<8x128xi32>
    %144 = arith.cmpi eq, %142, %143 : vector<8x128xi32>
    %145 = arith.extui %144 : vector<8x128xi1> to vector<8x128xi32>
    %146 = arith.sitofp %145 : vector<8x128xi32> to vector<8x128xf32>
    %147 = arith.truncf %146 : vector<8x128xf32> to vector<8x128xbf16>
    %cst_28 = arith.constant dense<0.000000e+00> : vector<8x8xf32>
    %148 = tpu.matmul %141, %147, %cst_28 {dimension_numbers = #tpu.dot_dimension_numbers<[1], [1], [0], [0], [0, 0, 1, 0], [], []>} : vector<8x128xbf16>, vector<8x128xbf16>, vector<8x8xf32> -> vector<8x8xf32>
    %149 = arith.addf %131, %148 : vector<8x8xf32>
    %c8_i32 = arith.constant 8 : i32
    %c0_29 = arith.constant 0 : index
    %c0_30 = arith.constant 0 : index
    %c0_31 = arith.constant 0 : index
    %150 = vector.load %arg6[%c0_29, %c0_30, %c0_31] : memref<1x8x8xf32, #tpu.memory_space<vmem>>, vector<1x8x8xf32>
    %151 = vector.shape_cast %150 : vector<1x8x8xf32> to vector<8x8xf32>
    %152 = arith.addf %151, %149 : vector<8x8xf32>
    %c0_32 = arith.constant 0 : index
    %c0_33 = arith.constant 0 : index
    %c0_34 = arith.constant 0 : index
    %153 = vector.load %arg6[%c0_32, %c0_33, %c0_34] : memref<1x8x8xf32, #tpu.memory_space<vmem>>, vector<1x8x8xf32>
    %154 = vector.shape_cast %153 : vector<1x8x8xf32> to vector<8x8xf32>
    %155 = vector.shape_cast %152 : vector<8x8xf32> to vector<1x8x8xf32>
    tpu.vector_store %arg6[%c0_32, %c0_33, %c0_34], %155 {strides = array<i32>} : memref<1x8x8xf32, #tpu.memory_space<vmem>>, vector<1x8x8xf32>,
    return
  }
  func.func @transform_0(%arg0: i32, %arg1: i32) -> (i32, i32) {
    %c1_i32 = arith.constant 1 : i32
    %0 = arith.muli %arg0, %c1_i32 : i32
    %1 = arith.addi %0, %arg1 : i32
    %c0_i32 = arith.constant 0 : i32
    %c0_i32_0 = arith.constant 0 : i32
    return %1, %c0_i32 : i32, i32
  }
  func.func @transform_1(%arg0: i32, %arg1: i32) -> (i32, i32) {
    %c1_i32 = arith.constant 1 : i32
    %0 = arith.muli %arg0, %c1_i32 : i32
    %1 = arith.addi %0, %arg1 : i32
    %c0_i32 = arith.constant 0 : i32
    %c0_i32_0 = arith.constant 0 : i32
    return %1, %c0_i32 : i32, i32
  }
  func.func @transform_2(%arg0: i32, %arg1: i32) -> (i32, i32) {
    %c0_i32 = arith.constant 0 : i32
    %c0_i32_0 = arith.constant 0 : i32
    %c0_i32_1 = arith.constant 0 : i32
    return %c0_i32, %c0_i32_0 : i32, i32
  }
  func.func @transform_3(%arg0: i32, %arg1: i32) -> (i32, i32) {
    %c0_i32 = arith.constant 0 : i32
    %c0_i32_0 = arith.constant 0 : i32
    %c0_i32_1 = arith.constant 0 : i32
    return %c0_i32, %c0_i32_0 : i32, i32
  }
  func.func @transform_4(%arg0: i32, %arg1: i32) -> (i32, i32, i32) {
    %c0_i32 = arith.constant 0 : i32
    %c0_i32_0 = arith.constant 0 : i32
    %c0_i32_1 = arith.constant 0 : i32
    return %arg0, %c0_i32, %c0_i32_0 : i32, i32, i32
  }
}

</mosaic_0001>

<bundles_post_ra>
// kernel: tpu_custom_call.1
= control target key start
LH: loop header
LB: loop body
LE: loop exit
PB: predicated region body
PF: predicated region fallthrough
CT: control target
= control target key end

     0   :  { %9 = vsyncpa [#allocation3], 0  ;;  %s1447_s0 = inlined_call_operand.vmem [shape: s32[16,128], index: 0, kind: input, shape index: {}]   ;;  %s1448_s1 = inlined_call_operand.hbm [shape: s32[16,128], index: 1, kind: input, shape index: {}]   ;;  %s1449_s2 = inlined_call_operand.vmem [shape: s32[8,1], index: 2, kind: input, shape index: {}]   ;;  %s1450_s3 = inlined_call_operand.vmem [shape: s32[8,1], index: 3, kind: input, shape index: {}]   ;;  %s1451_s4 = inlined_call_operand.hbm [shape: f32[2,8,8], index: 4, kind: output, shape index: {}]  }
   0x1   :  { %11 = vsyncpa [#allocation3 + $0x1], 0 }
   0x2   :  { %12 = vsyncpa [#allocation4], 0 }
   0x3   :  { %14 = vsyncpa [#allocation4 + $0x1], 0  ;;  %s1197_s15 = smov 0   ;;  %s1199_s16 = smov 0  }
   0x4   :  { %s1201_s17 = smov 0   ;;  %s1203_s18 = smov 0  }
   0x5   :  { %s1205_s19 = smov 0   ;;  %s1207_s20 = smov 0  }
   0x6 LB: > { %s847_s21 = sadd.s32 4294967295, %s1164_s20   ;;  %s848_s22 = sadd.s32 4294967294, %s1164_s20   ;;  %s1164_s20 = sphi %s1207_s20, %s20_s20   ;;  %s1160_s19 = sphi %s1205_s19, %s1463_s19   ;;  %s1156_s18 = sphi %s1203_s18, %s1462_s18   ;;  %s1152_s17 = sphi %s1201_s17, %s1461_s17   ;;  %s1148_s16 = sphi %s1199_s16, %s1460_s16   ;;  %s1144_s15 = sphi %s1197_s15, %s1459_s15  }
   0x7   : > { %s32_s23 = sadd.s32 1, %s1160_s19  ;;  %s69_s24 = sadd.s32 1, %s1152_s17 }
   0x8   : > { %p34_p0 = scmp.ge.s32.totalorder %s32_s23, 2  ;;  %p76_p1 = scmp.ne.s32.totalorder %s1152_s17, %s1148_s16 }
   0x9   : > { %p77_p2 = scmp.eq.s32.totalorder %s1164_s20, 0  ;;  %p82_p3 = scmp.ne.s32.totalorder %s1148_s16, %s1144_s15 }
   0xa   : > { %s1465_s23 = smov (%p34_p0, %s32_s23), 0  ;;  %p83_p5 = scmp.eq.s32.totalorder %s847_s21, 0 }
   0xb   : > { %p1238_p4 = por %p77_p2, %p76_p1  ;;  %s66_s26 = ssub.s32 %s1160_s19, %s1465_s23 }
   0xc   : > { %p148_p6 = scmp.eq.s32.totalorder %s847_s21, 1  ;;  %p67_p7 = scmp.eq.s32.totalorder %s66_s26, 0 }
   0xd   : > { %p1244_p8 = por %p83_p5, %p82_p3  ;;  %p154_p10 = scmp.eq.s32.totalorder %s848_s22, 1 }
   0xe   : > { %p1248_p9 = por %p148_p6, %p76_p1  ;;  %p1001_p13 = scmp.lt.s32.totalorder %s1164_s20, 2 }
   0xf   : > { %s1253_s29 = scalar_select %p67_p7, %s1152_s17, %s69_s24  }
  0x10   : > { %p1255_p11 = por %p154_p10, %p82_p3  ;;  %s189_s5 = sand.u32 1, %s1152_s17  }
  0x11   : > { %s851_s6 = sshll.u32 %s189_s5, 3  ;;  %s852_s7 = sshll.u32 %s1160_s19, 7 }
  0x12   : > { %s1455_s30 = scalar_select %p1255_p11, 1, 0 }
  0x13   : > { %s199_s10 = scalar_lea.hbm %s1448_s1, %s852_s7  ;;  %s193_s11 = scalar_lea.vmem [#allocation2], %s851_s6 }
  0x14   : > { %s201_s12 = sshll.u32 %s193_s11, 4  ;;  %p1268_p0 = pnand %p1001_p13, %p1238_p4  ;;  %s202_s12 = int_to_ptr.vmem [resolvable:$true] %s201_s12 }
  0x15   : > { %p853_p1 = scmp.ge.s32.totalorder %s1164_s20, 1  ;;  %p206_p2 = scmp.lt.s32.totalorder %s1164_s20, 3 }
  0x16   : > { %s190_s14 = scalar_lea.sflag [#allocation3], %s189_s5  ;;  %p1058_p3 = pneg %p1268_p0 }
  0x17   : > { %s1069_s21 = scalar_lea.vmem %s202_s12, 128  ;;  %s1166_s22 = smov [#allocation2]  }
  0x18   : > { %p1070_p5 = scmp.ne.s32.totalorder %s202_s12, %s1069_s21  ;;  %s1074_s24 = sshll.u32 %s1166_s22, 4  ;;  %s1075_s24 = int_to_ptr.vmem [resolvable:$false] %s1074_s24 }
  0x19   : > { %s1076_s26 = scalar_lea.vmem %s1075_s24, 256  ;;  %p1077_p10 = scmp.lt.s32.totalorder %s202_s12, %s1075_s24 }
  0x1a   : > { %p1072_p6 = pnand %p1070_p5, %p1058_p3  ;;  %p1078_p12 = scmp.lt.s32.totalorder %s1076_s26, %s1069_s21 }
  0x1c   : > { %p1073_p7 = pneg %p1072_p6  ;;  %p1079_p4 = por %p1078_p12, %p1077_p10 }
  0x1e   : > { %p1080_p13 = pnand %p1079_p4, %p1073_p7 }
  0x20   : > { %1083 = shalt.err (!%p1080_p13)
}
  0x21   : > { %996 = dma.hbm_to_vmem [thread:$0]  (!%p1268_p0), %s199_s10, 128, %s202_s12, %s190_s14  }
  0x22   : > { %p207_p11 = pnand %p853_p1, %p206_p2 }
  0x23   : > { %s1283_s25 = sand.u32 (!%p207_p11), 1, %s1148_s16  }
  0x24   : > { %210 = sbr.rel (%p207_p11) target bundleno = 413 (0x19d), region = 36  ;;  %s854_s5 = sshll.u32 (!%p207_p11), %s1283_s25, 3 }
  0x25   : > { %s213_s6 = scalar_lea.sflag (!%p207_p11), [#allocation3], %s1283_s25  ;;  %s1289_s7 = scalar_lea.vmem (!%p207_p11), [#allocation2], %s854_s5 }
  0x29   : > { %1135 = dma.done.wait (%p1244_p8), %s213_s6, 128  }
  0x2a   : > { %1137 = vsyncadd (%p1244_p8), %s213_s6, 4294967168  ;;  %v1167_v0 = vmov 0   ;;  %v1168_v1 = vmov 0.0   ;;  %v261_v2 = vld [vmem:[%s1450_s3] sm:$0xff]  ;;  %vm1169_vm0 = vmmov 0   ;;  %p247_p8 = scmp.lt.s32.totalorder %s1156_s18, 1 }
  0x2b   : > { %1055 = vset.pattern.permute.xlu0 %v1167_v0  ;;  %941 = vmatprep.subr.bf16.mxu0 %v1168_v1  ;;  %v260_v3 = vld [vmem:[%s1449_s2] sm:$0xff]  ;;  %v1170_v8 = vmov 1.0|1.0   ;;  %s1386_s22 = scalar_lea.vmem [#allocation5], %s854_s5  ;;  %s922_s24 = sshll.u32 %s1156_s18, 7 }
  0x2c   : > { %947 = vmatprep.subr.bf16.mxu1 %v1168_v1  ;;  %280 = vperm.xlu0 %1055, %v261_v2   ;;  %s248_s11 = scalar_select %p247_p8, %s1156_s18, 1  ;;  %v863_v4 = vld [vmem:[%s1289_s7 + $0x1] ss:$0 sm:$0xff]  ;;  %v859_v5 = vld [vmem:[%s1289_s7] ss:$0 sm:$0xff] }
  0x2d   : > { %943 = vmatprep.mubr.msk.bf16.mxu0 %vm1169_vm0, %v1168_v1  ;;  %949 = vmatprep.mubr.msk.bf16.mxu1 %vm1169_vm0, %v1168_v1  ;;  %v875_v7 = vld [vmem:[%s1289_s7 + $0x2] ss:$0 sm:$0xff]  ;;  %v883_v12 = vld [vmem:[%s1289_s7 + $0x3] ss:$0 sm:$0xff]  ;;  %v891_v15 = vld [vmem:[%s1289_s7 + $0x4] ss:$0 sm:$0xff] }
  0x2e   : > { %s856_s12 = sshll.u32 %s248_s11, 3  ;;  %v899_v16 = vld [vmem:[%s1289_s7 + $0x5] ss:$0 sm:$0xff]  ;;  %v907_v19 = vld [vmem:[%s1289_s7 + $0x6] ss:$0 sm:$0xff]  ;;  %s756_s26 = sshll.u32 %s1386_s22, 4  ;;  %s1399_s26 = int_to_ptr.vmem [resolvable:$true] %s756_s26 }
  0x2f   : > { %s1316_s21 = scalar_lea.vmem %s1447_s0, %s856_s12  ;;  %v915_v20 = vld [vmem:[%s1289_s7 + $0x7] ss:$0 sm:$0xff]  ;;  %s1397_s7 = scalar_lea.hbm %s1451_s4, %s922_s24 }
  0x30   : > { %269 = vperm.xlu0 %1055, %v260_v3   ;;  %v861_v9 = vld [vmem:[%s1316_s21 + $0x1] ss:$0 sm:$0xff]  ;;  %v857_v11 = vld [vmem:[%s1316_s21] ss:$0 sm:$0xff]  ;;  %v873_v13 = vld [vmem:[%s1316_s21 + $0x2] ss:$0 sm:$0xff] }
  0x31   : > { %v881_v14 = vld [vmem:[%s1316_s21 + $0x3] ss:$0 sm:$0xff]  ;;  %v889_v17 = vld [vmem:[%s1316_s21 + $0x4] ss:$0 sm:$0xff]  ;;  %v897_v18 = vld [vmem:[%s1316_s21 + $0x5] ss:$0 sm:$0xff] }
  0x32   : > { %v905_v21 = vld [vmem:[%s1316_s21 + $0x6] ss:$0 sm:$0xff]  ;;  %v913_v22 = vld [vmem:[%s1316_s21 + $0x7] ss:$0 sm:$0xff]  ;;  %s743_s18 = scalar_lea.sflag [#allocation4], %s1283_s25  ;;  %s1084_s8 = scalar_lea.vmem %s1399_s26, 128 }
  0x33   : > { %p1085_p11 = scmp.ne.s32.totalorder %s1399_s26, %s1084_s8  ;;  %s1171_s9 = smov [#allocation5]  }
  0x34   : > { %s1088_s27 = sshll.u32 %s1171_s9, 4  ;;  %s1089_s27 = int_to_ptr.vmem [resolvable:$false] %s1088_s27 }
  0x35   : > { %p1086_p12 = pnand %p1085_p11, %p1248_p9  ;;  %s1090_s10 = scalar_lea.vmem %s1089_s27, 256 }
  0x36   : > { %p1091_p1 = scmp.lt.s32.totalorder %s1399_s26, %s1089_s27  ;;  %p1092_p2 = scmp.lt.s32.totalorder %s1090_s10, %s1084_s8 }
  0x37   : > { %p1087_p0 = pneg %p1086_p12 }
  0x38   : > { %p1093_p3 = por %p1092_p2, %p1091_p1 }
  0x3a   : > { %p1094_p5 = pnand %p1093_p3, %p1087_p0 }
  0xa7   : > { %v1311_v6 = vpop.permute.xlu0 %280 }
  0xa8   : > { %vm300_vm1 = vcmp.eq.s32.totalorder %v863_v4, %v1311_v6  ;;  %vm282_vm2 = vcmp.eq.s32.totalorder %v859_v5, %v1311_v6  ;;  %vm398_vm5 = vcmp.eq.s32.totalorder %v875_v7, %v1311_v6  ;;  %vm457_vm9 = vcmp.eq.s32.totalorder %v883_v12, %v1311_v6 }
  0xa9   : > { %vm865_vm3 = vmpackc.low %vm300_vm1, %vm300_vm1  ;;  %vm516_vm15 = vcmp.eq.s32.totalorder %v891_v15, %v1311_v6 }
  0xaa   : > { %942 = vmatpush3.bf16.xpose.msk.msra.mxu0 %vm865_vm3, %v1170_v8  ;;  %vm869_vm4 = vmpackc.low %vm282_vm2, %vm282_vm2  ;;  %vm575_vm2 = vcmp.eq.s32.totalorder %v899_v16, %v1311_v6 }
  0xab   : > { %948 = vmatpush3.bf16.xpose.msk.msra.mxu1 %vm869_vm4, %v1170_v8  ;;  %v1324_v10 = vpop.permute.xlu0 %269  ;;  %953 = vmatprep.subr.bf16.mxu0 %v1168_v1  ;;  %vm877_vm8 = vmpackc.low %vm398_vm5, %vm398_vm5 }
  0xac   : > { %959 = vmatprep.subr.bf16.mxu1 %v1168_v1  ;;  %vm292_vm6 = vcmp.eq.s32.totalorder %v861_v9, %v1324_v10  ;;  %vm271_vm7 = vcmp.eq.s32.totalorder %v857_v11, %v1324_v10  ;;  %vm885_vm12 = vmpackc.low %vm457_vm9, %vm457_vm9  ;;  %vm390_vm13 = vcmp.eq.s32.totalorder %v873_v13, %v1324_v10  ;;  %vm449_vm14 = vcmp.eq.s32.totalorder %v881_v14, %v1324_v10 }
  0xad   : > { %vm867_vm10 = vmpackc.low %vm292_vm6, %vm292_vm6  ;;  %vm508_vm6 = vcmp.eq.s32.totalorder %v889_v17, %v1324_v10 }
  0xae   : > { %vm871_vm11 = vmpackc.low %vm271_vm7, %vm271_vm7  ;;  %vm567_vm7 = vcmp.eq.s32.totalorder %v897_v18, %v1324_v10 }
  0xaf   : > { %vm879_vm1 = vmpackc.low %vm390_vm13, %vm390_vm13 }
  0xb0   : > { %vm887_vm3 = vmpackc.low %vm449_vm14, %vm449_vm14  ;;  %vm626_vm14 = vcmp.eq.s32.totalorder %v905_v21, %v1324_v10 }
  0xb1   : > { %944 = vmatmul.mubr.msk.bf16.vlgmr.msra.gmra.mxu0 %vm867_vm10, %v1170_v8  ;;  %vm893_vm4 = vmpackc.low %vm516_vm15, %vm516_vm15  ;;  %vm693_vm10 = vcmp.eq.s32.totalorder %v915_v20, %v1311_v6  ;;  %vm685_vm15 = vcmp.eq.s32.totalorder %v913_v22, %v1324_v10 }
  0xb2   : > { %950 = vmatmul.mubr.msk.bf16.vlgmr.msra.gmra.mxu1 %vm871_vm11, %v1170_v8  ;;  %954 = vmatpush3.bf16.xpose.msk.msra.mxu0 %vm877_vm8, %v1170_v8  ;;  %vm901_vm5 = vmpackc.low %vm575_vm2, %vm575_vm2  ;;  %vm634_vm8 = vcmp.eq.s32.totalorder %v907_v19, %v1311_v6 }
  0xb3   : > { %960 = vmatpush3.bf16.xpose.msk.msra.mxu1 %vm885_vm12, %v1170_v8  ;;  %955 = vmatprep.mubr.msk.bf16.mxu0 %vm1169_vm0, %v1168_v1  ;;  %vm895_vm9 = vmpackc.low %vm508_vm6, %vm508_vm6 }
  0xb4   : > { %961 = vmatprep.mubr.msk.bf16.mxu1 %vm1169_vm0, %v1168_v1  ;;  %965 = vmatprep.subr.bf16.mxu0 %v1168_v1  ;;  %vm903_vm11 = vmpackc.low %vm567_vm7, %vm567_vm7 }
  0xb5   : > { %971 = vmatprep.subr.bf16.mxu1 %v1168_v1  ;;  %vm909_vm12 = vmpackc.low %vm634_vm8, %vm634_vm8 }
  0xb6   : > { %vm917_vm13 = vmpackc.low %vm693_vm10, %vm693_vm10 }
  0xb7   : > { %vm919_vm2 = vmpackc.low %vm685_vm15, %vm685_vm15 }
  0xb9   : > { %956 = vmatmul.mubr.msk.bf16.vlgmr.msra.gmra.mxu0 %vm879_vm1, %v1170_v8  ;;  %vm911_vm1 = vmpackc.low %vm626_vm14, %vm626_vm14 }
  0xba   : > { %962 = vmatmul.mubr.msk.bf16.vlgmr.msra.gmra.mxu1 %vm887_vm3, %v1170_v8  ;;  %966 = vmatpush3.bf16.xpose.msk.msra.mxu0 %vm893_vm4, %v1170_v8  ;;  %vm258_vm3 = vcmask 64512  }
  0xbb   : > { %972 = vmatpush3.bf16.xpose.msk.msra.mxu1 %vm901_vm5, %v1170_v8  ;;  %967 = vmatprep.mubr.msk.bf16.mxu0 %vm1169_vm0, %v1168_v1  ;;  %259 = vst.msk [vmem:[%s1386_s22] sm:$0xff] %vm258_vm3, %v1168_v1 }
  0xbc   : > { %973 = vmatprep.mubr.msk.bf16.mxu1 %vm1169_vm0, %v1168_v1  ;;  %977 = vmatprep.subr.bf16.mxu0 %v1168_v1 }
  0xbd   : > { %983 = vmatprep.subr.bf16.mxu1 %v1168_v1 }
  0xc1   : > { %968 = vmatmul.mubr.msk.bf16.vlgmr.msra.gmra.mxu0 %vm895_vm9, %v1170_v8 }
  0xc2   : > { %974 = vmatmul.mubr.msk.bf16.vlgmr.msra.gmra.mxu1 %vm903_vm11, %v1170_v8  ;;  %978 = vmatpush3.bf16.xpose.msk.msra.mxu0 %vm909_vm12, %v1170_v8  ;;  %v738_v55 = vld [vmem:[%s1386_s22] sm:$0xff] }
  0xc3   : > { %984 = vmatpush3.bf16.xpose.msk.msra.mxu1 %vm917_vm13, %v1170_v8  ;;  %979 = vmatprep.mubr.msk.bf16.mxu0 %vm1169_vm0, %v1168_v1 }
  0xc4   : > { %985 = vmatprep.mubr.msk.bf16.mxu1 %vm1169_vm0, %v1168_v1 }
  0xc9   : > { %980 = vmatmul.mubr.msk.bf16.vlgmr.msra.gmra.mxu0 %vm911_vm1, %v1170_v8 }
  0xca   : > { %986 = vmatmul.mubr.msk.bf16.vlgmr.msra.gmra.mxu1 %vm919_vm2, %v1170_v8 }
 0x171   : > { %v338_v23 = vpop.f32.mrf.mxu0 }
 0x172   : > { %v378_v24 = vpop.f32.mrf.mxu1 }
 0x173   : > { %v945_v25 = vpop.f32.mrf.mxu0  ;;  %v379_v34 = vadd.f32 %v378_v24, %v338_v23 }
 0x174   : > { %v951_v26 = vpop.f32.mrf.mxu1 }
 0x175   : > { %v341_v27 = vpop.f32.mrf.mxu0 }
 0x176   : > { %v381_v28 = vpop.f32.mrf.mxu1 }
 0x177   : > { %v946_v29 = vpop.f32.mrf.mxu0 }
 0x178   : > { %v952_v30 = vpop.f32.mrf.mxu1 }
 0x179   : > { %v436_v31 = vpop.f32.mrf.mxu0 }
 0x17a   : > { %v495_v32 = vpop.f32.mrf.mxu1  ;;  %v442_v37 = vadd.f32 %v436_v31, %v379_v34 }
 0x17b   : > { %v957_v33 = vpop.f32.mrf.mxu0 }
 0x17c   : > { %v963_v35 = vpop.f32.mrf.mxu1  ;;  %v501_v42 = vadd.f32 %v495_v32, %v442_v37 }
 0x17d   : > { %v439_v36 = vpop.f32.mrf.mxu0 }
 0x17e   : > { %v498_v38 = vpop.f32.mrf.mxu1 }
 0x17f   : > { %v958_v39 = vpop.f32.mrf.mxu0 }
 0x180   : > { %v964_v40 = vpop.f32.mrf.mxu1 }
 0x181   : > { %v554_v41 = vpop.f32.mrf.mxu0 }
 0x182   : > { %v613_v43 = vpop.f32.mrf.mxu1  ;;  %v560_v45 = vadd.f32 %v554_v41, %v501_v42 }
 0x183   : > { %v969_v44 = vpop.f32.mrf.mxu0 }
 0x184   : > { %v975_v46 = vpop.f32.mrf.mxu1  ;;  %v619_v50 = vadd.f32 %v613_v43, %v560_v45 }
 0x185   : > { %v557_v47 = vpop.f32.mrf.mxu0 }
 0x186   : > { %v616_v48 = vpop.f32.mrf.mxu1 }
 0x187   : > { %v970_v49 = vpop.f32.mrf.mxu0 }
 0x188   : > { %v976_v51 = vpop.f32.mrf.mxu1 }
 0x189   : > { %v672_v52 = vpop.f32.mrf.mxu0 }
 0x18a   : > { %v678_v53 = vadd.f32 %v672_v52, %v619_v50  ;;  %v731_v54 = vpop.f32.mrf.mxu1 }
 0x18b   : > { %v981_v56 = vpop.f32.mrf.mxu0 }
 0x18c   : > { %v737_v57 = vadd.f32 %v731_v54, %v678_v53  ;;  %v987_v58 = vpop.f32.mrf.mxu1 }
 0x18d   : > { %v675_v59 = vpop.f32.mrf.mxu0 }
 0x18e   : > { %v739_v60 = vadd.f32 %v738_v55, %v737_v57  ;;  %v734_v61 = vpop.f32.mrf.mxu1 }
 0x18f   : > { %v982_v62 = vpop.f32.mrf.mxu0 }
 0x190   : > { %741 = vst.msk [vmem:[%s1386_s22] sm:$0xff] %vm258_vm3, %v739_v60  ;;  %v988_v63 = vpop.f32.mrf.mxu1 }
 0x191   : > { %1097 = shalt.err (!%p1094_p5)
}
 0x192   : > { %s1098_s11 = scalar_lea.hbm %s1397_s7, 128  ;;  %s1102_s13 = scalar_lea.hbm %s1451_s4, 256 }
 0x193   : > { %p1099_p6 = scmp.ne.s32.totalorder %s1397_s7, %s1098_s11  ;;  %p1103_p4 = scmp.lt.s32.totalorder %s1397_s7, %s1451_s4 }
 0x194   : > { %p1104_p13 = scmp.lt.s32.totalorder %s1102_s13, %s1098_s11 }
 0x195   : > { %p1100_p7 = pnand %p1099_p6, %p1248_p9 }
 0x196   : > { %p1105_p8 = por %p1104_p13, %p1103_p4 }
 0x197   : > { %p1101_p10 = pneg %p1100_p7 }
 0x199   : > { %p1106_p11 = pnand %p1105_p8, %p1101_p10 }
 0x19b   : > { %1109 = shalt.err (!%p1106_p11)
}
 0x19c   : > { %991 = dma.vmem_to_hbm [thread:$0]  (%p1248_p9), %s1399_s26, 128, %s1397_s7, %s743_s18  }
 0x19d PF: > { %s768_s22 = sand.u32 1, %s1144_s15   ;;  %p1457_p12 = scmp.ne.s32.totalorder %s1455_s30, 0 }
 0x19e   : > { %p1458_p0 = scmp.ge.s32.totalorder %s1164_s20, 2  ;;  %s769_s24 = scalar_lea.sflag [#allocation4], %s768_s22 }
 0x1a0   : > { %p998_p1 = pnand %p1458_p0, %p1457_p12 }
 0x1a2   : > { %p999_p2 = pneg %p998_p1 }
 0x1a4   : > { %1139 = dma.done.wait (%p999_p2), %s769_s24, 128  }
 0x1a5   : > { %1141 = vsyncadd (%p999_p2), %s769_s24, 4294967168  ;;  %s20_s20 = sadd.s32 1, %s1164_s20   ;;  %s1459_s15 = smov %s1148_s16 }
 0x1a6   : > { %p17_p3 = scmp.ge.s32.totalorder %s20_s20, 4   ;;  %s1460_s16 = smov %s1152_s17 }
 0x1a7   : > { %s1461_s17 = smov %s1253_s29  ;;  %s1462_s18 = smov %s1160_s19 }
 0x1a8   : > { %s1463_s19 = smov %s1465_s23  ;;  %19 = sbr.rel (!%p17_p3) target bundleno = 6 (0x6), region = 88 }
 0x1ad   :  { %774 = vsyncpa [#allocation3], 1 }
 0x1ae   :  { %776 = vsyncpa [#allocation3 + $0x1], 1 }
 0x1af   :  { %777 = vsyncpa [#allocation4], 1 }
 0x1b0   :  { %779 = vsyncpa [#allocation4 + $0x1], 1 }

</bundles_post_ra>
